<compile_context>
chip_gen: v5e
topology: v5e:2x2
jax: 0.10.0
libtpu: 0.0.40
codegen_flags: <defaults>
</compile_context>

<pallas_src>
import jax
import jax.numpy as jnp
from jax.experimental import pallas as pl
from jax.experimental.pallas import tpu as pltpu


def _causal_conv1d_kernel(x_ref, prev_ref, state_ref, w_ref, b_ref, o_ref):
    """One (batch, seq-tile) grid step of the depthwise causal conv.

    x_ref     : (TS, H)     current sequence tile
    prev_ref  : (FRONT, H)  last FRONT rows of the previous tile (ignored at s==0)
    state_ref : (FRONT, H)  initial halo; last `pad` rows = conv_state / zeros
    w_ref     : (KS, H)     depthwise weights, one row per tap
    b_ref     : (1, H)      bias
    o_ref     : (TS, H)     output tile
    """
    s = pl.program_id(1)
    KS, H = w_ref.shape
    pad = KS - 1
    TS = o_ref.shape[0]
    FRONT = state_ref.shape[0]

    # Halo for this tile: conv_state (or zeros) on the first tile, otherwise the
    # tail of the previous tile.  FRONT x H is tiny, so the select is cheap and
    # keeps every grid step independent (no cross-step carry -> both grid axes
    # are "parallel").
    front = jnp.where(s == 0, state_ref[...], prev_ref[...])

    # Single load of the tile.  The causal window is built as a value, so the
    # per-tap shifts below are in-register sublane shifts (XLU), not misaligned
    # VMEM re-loads, and there is no staging store at all.
    x = x_ref[...]
    xw = jnp.concatenate([front, x], axis=0)              # (FRONT + TS, H)

    # Hoisted weight / bias loads + casts (JAX does not CSE these per tap).
    w = w_ref[...].astype(jnp.float32)                    # (KS, H)
    acc = jnp.broadcast_to(b_ref[...].astype(jnp.float32), (TS, H))

    # y[t] = bias + sum_k w[k] * x_full[t - pad + k]; statically unrolled taps.
    base = FRONT - pad                                    # >= 0 since FRONT >= pad
    for k in range(KS):
        tap = xw[base + k:base + k + TS, :]
        acc = acc + tap.astype(jnp.float32) * w[k, :][None, :]

    o_ref[...] = acc.astype(o_ref.dtype)


def _round_up(n, m):
    return -(-n // m) * m


def _sublane_pack(dtype):
    """Sublane packing for this dtype: 8 for f32, 16 for bf16, 32 for int8/fp8."""
    return max(8, 32 // max(int(jnp.dtype(dtype).itemsize), 1))


def _vmem_capacity_bytes():
    """Physical VMEM per core; conservative fallback if the query is unavailable."""
    try:
        cap = getattr(pltpu.get_tpu_info(), "vmem_capacity_bytes", None)
        if cap:
            return int(cap)
    except Exception:
        pass
    return 64 * 1024 * 1024                               # v7x-sized fallback


def _choose_tile_s(S, H, itemsize, front, budget_bytes):
    """Sequence-tile length: a multiple of `front`, as large as the VMEM budget
    allows (amortizes the ~0.35us/step overhead).  A ragged last tile is fine
    (edge writes are masked), so there is no exact-divisor search."""
    itemsize = max(int(itemsize), 1)
    # Per-row VMEM estimate: double-buffered input + output tiles plus the
    # in-kernel window / f32-accumulator temporaries.
    per_row = max(H, 1) * (6 * itemsize + 8)
    cap = budget_bytes // per_row
    cap = max(front, (cap // front) * front)
    if S <= cap:
        return _round_up(S, front)                        # single (maybe ragged) tile
    return cap                                            # multi-tile, ragged tail OK


def causal_conv1d(x, weight, bias=None, conv_state=None,
                  return_last_state=False, tile_s=None):
    """Forward pass of CausalConv1d (channel_mixing=False).

    x         : (B, S, H)
    weight    : (H, 1, KS)   PyTorch depthwise Conv1d weight layout
    bias      : (H,) or None
    conv_state: optional (B, KS-1, H) rows preceding x (replaces zero padding)
    Returns y (B, S, H) and, optionally, the last state (the KS-1 rows preceding
    the next step), matching the PyTorch module.
    """
    B, S, H = x.shape
    KS = weight.shape[-1]
    pad = KS - 1
    dtype = x.dtype
    x_in = x                                              # unpadded, for last_state

    if conv_state is not None:
        assert conv_state.shape[1] == pad, "conv_state must have KS-1 rows"

    # ---- lane-dense channel padding (full 128-lane stores) ----
    Hp = H if H % 128 == 0 else _round_up(H, 128)
    w_in, b_in, cs_in = weight, bias, conv_state
    if Hp != H:
        x = jnp.pad(x, ((0, 0), (0, 0), (0, Hp - H)))
        w_in = jnp.pad(weight, ((0, Hp - H), (0, 0), (0, 0)))
        if bias is not None:
            b_in = jnp.pad(bias, ((0, Hp - H),))
        if conv_state is not None:
            cs_in = jnp.pad(conv_state, ((0, 0), (0, 0), (0, Hp - H)))

    # (H, 1, KS) -> (KS, H): w2d[k, h] = weight[h, 0, k]
    w2d = jnp.transpose(w_in[:, 0, :], (1, 0))
    if b_in is None:
        b_in = jnp.zeros((Hp,), dtype)
    b2d = b_in.reshape(1, Hp)

    # Tiny (B, FRONT, Hp) halo block; FRONT = pad rounded up to the dtype's
    # sublane packing.  Its last `pad` rows hold conv_state (or causal zeros).
    sub = _sublane_pack(dtype)
    FRONT = _round_up(max(pad, 1), sub)
    state_full = jnp.zeros((B, FRONT, Hp), dtype)
    if cs_in is not None and pad > 0:
        state_full = state_full.at[:, FRONT - pad:, :].set(cs_in.astype(dtype))

    # ---- generation-aware VMEM budgets (v5e/v6e: 128 MiB, v7x: 64 MiB) ----
    vmem_cap = _vmem_capacity_bytes()
    vmem_limit = min(96 * 1024 * 1024, (vmem_cap * 3) // 4)   # 96 MiB / 48 MiB
    tile_budget = min(32 * 1024 * 1024, vmem_cap // 4)        # 32 MiB / 16 MiB

    itemsize = jnp.dtype(dtype).itemsize
    if tile_s is None:
        TS = _choose_tile_s(S, Hp, itemsize, FRONT, tile_budget)
    else:
        TS = _round_up(max(int(tile_s), 1), FRONT)
    NS = pl.cdiv(S, TS)
    ratio = TS // FRONT                                   # TS is a multiple of FRONT

    y = pl.pallas_call(
        _causal_conv1d_kernel,
        out_shape=jax.ShapeDtypeStruct((B, S, Hp), dtype),
        grid_spec=pltpu.PrefetchScalarGridSpec(
            num_scalar_prefetch=0,
            grid=(B, NS),
            in_specs=[
                # current sequence tile
                pl.BlockSpec((None, TS, Hp), lambda b, s: (b, s, 0)),
                # tail (last FRONT rows) of the previous tile; clamped to block 0
                # at s == 0 where its value is ignored.
                pl.BlockSpec((None, FRONT, Hp),
                             lambda b, s: (b, jnp.maximum(s * ratio - 1, 0), 0)),
                # conv_state / zero halo (used only at s == 0)
                pl.BlockSpec((None, FRONT, Hp), lambda b, s: (b, 0, 0)),
                pl.BlockSpec((KS, Hp), lambda b, s: (0, 0)),     # weights
                pl.BlockSpec((1, Hp), lambda b, s: (0, 0)),      # bias
            ],
            out_specs=pl.BlockSpec((None, TS, Hp), lambda b, s: (b, s, 0)),
        ),
        compiler_params=pltpu.CompilerParams(
            # Every grid step is independent (halo comes from BlockSpecs, not a
            # carried scratch), so both axes are megacore-shardable.
            dimension_semantics=("parallel", "parallel"),
            vmem_limit_bytes=int(vmem_limit),
        ),
    )(x, x, state_full, w2d, b2d)

    if Hp != H:
        y = y[:, :, :H]

    if return_last_state:
        if pad == 0:
            last_state = x_in[:, :0, :]
        elif S >= pad:
            last_state = x_in[:, S - pad:, :]
        elif conv_state is not None:
            last_state = jnp.concatenate([conv_state[:, S:, :].astype(x_in.dtype), x_in],
                                         axis=1)
        else:
            # S < pad without conv_state: the implicit causal state is zeros, so
            # return a full (KS-1)-row state (zero rows in front).
            last_state = jnp.concatenate(
                [jnp.zeros((B, pad - S, H), x_in.dtype), x_in], axis=1)
        return y, last_state
    return y


def _reference(x, weight, bias, conv_state=None):
    """Pure-JAX reference of the depthwise causal conv (for correctness check)."""
    B, S, H = x.shape
    KS = weight.shape[-1]
    pad = KS - 1
    front = conv_state if conv_state is not None else jnp.zeros((B, pad, H), x.dtype)
    xf = jnp.concatenate([front.astype(x.dtype), x], axis=1)
    w2d = jnp.transpose(weight[:, 0, :], (1, 0))           # (KS, H)
    y = jnp.broadcast_to(bias.astype(jnp.float32)[None, None, :], (B, S, H))
    for k in range(KS):
        y = y + xf[:, k:k + S, :].astype(jnp.float32) * w2d[k].astype(jnp.float32)[None, None, :]
    return y.astype(x.dtype)


if __name__ == "__main__":
    key = jax.random.PRNGKey(0)
    kx, kw, kb, ks = jax.random.split(key, 4)

    # 1) f32, lane-dense H = 128, single-tile path
    B, S, H, KS = 2, 16, 128, 4
    bound = 1.0 / (KS ** 0.5)
    x = jax.random.normal(kx, (B, S, H), dtype=jnp.float32)
    weight = jax.random.uniform(kw, (H, 1, KS), minval=-bound, maxval=bound,
                                dtype=jnp.float32)
    bias = jax.random.uniform(kb, (H,), minval=-bound, maxval=bound,
                              dtype=jnp.float32)
    y = jax.block_until_ready(causal_conv1d(x, weight, bias))
    y_ref = _reference(x, weight, bias)
    assert y.shape == (B, S, H)
    assert jnp.allclose(y, y_ref, atol=1e-5, rtol=1e-5), "mismatch (default tiling)"

    # 2) multi-tile sequence path + conv_state + return_last_state
    conv_state = jax.random.normal(ks, (B, KS - 1, H), dtype=jnp.float32)
    y2, last_state = causal_conv1d(x, weight, bias, conv_state=conv_state,
                                   return_last_state=True, tile_s=8)
    y2 = jax.block_until_ready(y2)
    y2_ref = _reference(x, weight, bias, conv_state=conv_state)
    assert y2.shape == (B, S, H) and last_state.shape == (B, KS - 1, H)
    assert jnp.allclose(y2, y2_ref, atol=1e-5, rtol=1e-5), "mismatch (conv_state)"
    assert jnp.allclose(last_state, x[:, -(KS - 1):, :]), "mismatch (last_state)"

    # 3) bf16, multi-tile with a ragged last tile (S=40, TS=16 -> tiles 16,16,8)
    xb = jax.random.normal(kx, (1, 40, 128), dtype=jnp.bfloat16)
    wb = weight.astype(jnp.bfloat16)
    bb = bias.astype(jnp.bfloat16)
    yb = jax.block_until_ready(causal_conv1d(xb, wb, bb, tile_s=16))
    yb_ref = _reference(xb, wb, bb)
    assert jnp.allclose(yb.astype(jnp.float32), yb_ref.astype(jnp.float32),
                        atol=2e-2, rtol=2e-2), "mismatch (bf16 ragged tiles)"

    # 4) narrow channel count (H=96 -> padded to 128 lanes inside the wrapper)
    xn = jax.random.normal(ks, (2, 24, 96), dtype=jnp.float32)
    wn = jax.random.uniform(kw, (96, 1, KS), minval=-bound, maxval=bound,
                            dtype=jnp.float32)
    bn = jax.random.uniform(kb, (96,), minval=-bound, maxval=bound,
                            dtype=jnp.float32)
    yn = jax.block_until_ready(causal_conv1d(xn, wn, bn, tile_s=8))
    assert jnp.allclose(yn, _reference(xn, wn, bn), atol=1e-5, rtol=1e-5), \
        "mismatch (narrow H)"

    print("KERNEL_OK")
</pallas_src>

<mosaic_0001>
module attributes {stable_mosaic.version = 11 : i64} {
  func.func @_causal_conv1d_kernel(%arg0: i32, %arg1: i32, %arg2: memref<1x16x128xf32, #tpu.memory_space<vmem>>, %arg3: memref<1x8x128xf32, #tpu.memory_space<vmem>>, %arg4: memref<1x8x128xf32, #tpu.memory_space<vmem>>, %arg5: memref<4x128xf32, #tpu.memory_space<vmem>>, %arg6: memref<1x128xf32, #tpu.memory_space<vmem>>, %arg7: memref<1x16x128xf32, #tpu.memory_space<vmem>>) attributes {dimension_semantics = [#tpu.dimension_semantics<parallel>, #tpu.dimension_semantics<parallel>], iteration_bounds = array<i64: 2, 1>, scalar_prefetch = 0 : i64, scratch_operands = 0 : i64, tpu.core_type = #tpu.core_type<tc>, window_params = [{transform_indices = @transform_0, window_bounds = array<i64: 1, 16, 128>}, {transform_indices = @transform_1, window_bounds = array<i64: 1, 8, 128>}, {transform_indices = @transform_2, window_bounds = array<i64: 1, 8, 128>}, {pipeline_mode = #tpu.pipeline_mode<synchronous>, transform_indices = @transform_3, window_bounds = array<i64: 4, 128>}, {pipeline_mode = #tpu.pipeline_mode<synchronous>, transform_indices = @transform_4, window_bounds = array<i64: 1, 128>}, {transform_indices = @transform_5, window_bounds = array<i64: 1, 16, 128>}]} {
    %c0_i32 = arith.constant 0 : i32
    %0 = arith.cmpi eq, %arg1, %c0_i32 : i32
    %c0 = arith.constant 0 : index
    %c0_0 = arith.constant 0 : index
    %c0_1 = arith.constant 0 : index
    %1 = vector.load %arg4[%c0, %c0_0, %c0_1] : memref<1x8x128xf32, #tpu.memory_space<vmem>>, vector<1x8x128xf32>
    %2 = vector.shape_cast %1 : vector<1x8x128xf32> to vector<8x128xf32>
    %c0_2 = arith.constant 0 : index
    %c0_3 = arith.constant 0 : index
    %c0_4 = arith.constant 0 : index
    %3 = vector.load %arg3[%c0_2, %c0_3, %c0_4] : memref<1x8x128xf32, #tpu.memory_space<vmem>>, vector<1x8x128xf32>
    %4 = vector.shape_cast %3 : vector<1x8x128xf32> to vector<8x128xf32>
    %5 = arith.select %0, %2, %4 : vector<8x128xf32>
    %c0_5 = arith.constant 0 : index
    %c0_6 = arith.constant 0 : index
    %c0_7 = arith.constant 0 : index
    %6 = vector.load %arg2[%c0_5, %c0_6, %c0_7] : memref<1x16x128xf32, #tpu.memory_space<vmem>>, vector<1x16x128xf32>
    %7 = vector.shape_cast %6 : vector<1x16x128xf32> to vector<16x128xf32>
    %8 = tpu.concatenate %5, %7 in 0 : vector<8x128xf32>, vector<16x128xf32> -> vector<24x128xf32>
    %c0_8 = arith.constant 0 : index
    %c0_9 = arith.constant 0 : index
    %9 = vector.load %arg5[%c0_8, %c0_9] : memref<4x128xf32, #tpu.memory_space<vmem>>, vector<4x128xf32>
    %c0_10 = arith.constant 0 : index
    %c0_11 = arith.constant 0 : index
    %10 = vector.load %arg6[%c0_10, %c0_11] : memref<1x128xf32, #tpu.memory_space<vmem>>, vector<1x128xf32>
    %11 = vector.shape_cast %10 : vector<1x128xf32> to vector<1x128xf32>
    %12 = vector.broadcast %11 : vector<1x128xf32> to vector<16x128xf32>
    %13 = vector.extract_strided_slice %8 {offsets = [5, 0], sizes = [16, 128], strides = [1, 1]} : vector<24x128xf32> to vector<16x128xf32>
    %14 = vector.extract_strided_slice %9 {offsets = [0, 0], sizes = [1, 128], strides = [1, 1]} : vector<4x128xf32> to vector<1x128xf32>
    %15 = vector.shape_cast %14 : vector<1x128xf32> to vector<128xf32>
    %16 = vector.shape_cast %15 : vector<128xf32> to vector<1x128xf32>
    %17 = vector.broadcast %16 : vector<1x128xf32> to vector<16x128xf32>
    %18 = arith.mulf %13, %17 : vector<16x128xf32>
    %19 = arith.addf %12, %18 : vector<16x128xf32>
    %20 = vector.extract_strided_slice %8 {offsets = [6, 0], sizes = [16, 128], strides = [1, 1]} : vector<24x128xf32> to vector<16x128xf32>
    %21 = vector.extract_strided_slice %9 {offsets = [1, 0], sizes = [1, 128], strides = [1, 1]} : vector<4x128xf32> to vector<1x128xf32>
    %22 = vector.shape_cast %21 : vector<1x128xf32> to vector<128xf32>
    %23 = vector.shape_cast %22 : vector<128xf32> to vector<1x128xf32>
    %24 = vector.broadcast %23 : vector<1x128xf32> to vector<16x128xf32>
    %25 = arith.mulf %20, %24 : vector<16x128xf32>
    %26 = arith.addf %19, %25 : vector<16x128xf32>
    %27 = vector.extract_strided_slice %8 {offsets = [7, 0], sizes = [16, 128], strides = [1, 1]} : vector<24x128xf32> to vector<16x128xf32>
    %28 = vector.extract_strided_slice %9 {offsets = [2, 0], sizes = [1, 128], strides = [1, 1]} : vector<4x128xf32> to vector<1x128xf32>
    %29 = vector.shape_cast %28 : vector<1x128xf32> to vector<128xf32>
    %30 = vector.shape_cast %29 : vector<128xf32> to vector<1x128xf32>
    %31 = vector.broadcast %30 : vector<1x128xf32> to vector<16x128xf32>
    %32 = arith.mulf %27, %31 : vector<16x128xf32>
    %33 = arith.addf %26, %32 : vector<16x128xf32>
    %34 = vector.extract_strided_slice %8 {offsets = [8, 0], sizes = [16, 128], strides = [1, 1]} : vector<24x128xf32> to vector<16x128xf32>
    %35 = vector.extract_strided_slice %9 {offsets = [3, 0], sizes = [1, 128], strides = [1, 1]} : vector<4x128xf32> to vector<1x128xf32>
    %36 = vector.shape_cast %35 : vector<1x128xf32> to vector<128xf32>
    %37 = vector.shape_cast %36 : vector<128xf32> to vector<1x128xf32>
    %38 = vector.broadcast %37 : vector<1x128xf32> to vector<16x128xf32>
    %39 = arith.mulf %34, %38 : vector<16x128xf32>
    %40 = arith.addf %33, %39 : vector<16x128xf32>
    %c0_12 = arith.constant 0 : index
    %c0_13 = arith.constant 0 : index
    %c0_14 = arith.constant 0 : index
    %41 = vector.load %arg7[%c0_12, %c0_13, %c0_14] : memref<1x16x128xf32, #tpu.memory_space<vmem>>, vector<1x16x128xf32>
    %42 = vector.shape_cast %41 : vector<1x16x128xf32> to vector<16x128xf32>
    %43 = vector.shape_cast %40 : vector<16x128xf32> to vector<1x16x128xf32>
    tpu.vector_store %arg7[%c0_12, %c0_13, %c0_14], %43 {strides = array<i32>} : memref<1x16x128xf32, #tpu.memory_space<vmem>>, vector<1x16x128xf32>,
    return
  }
  func.func @transform_0(%arg0: i32, %arg1: i32) -> (i32, i32, i32) {
    %c0_i32 = arith.constant 0 : i32
    %c0_i32_0 = arith.constant 0 : i32
    return %arg0, %arg1, %c0_i32 : i32, i32, i32
  }
  func.func @transform_1(%arg0: i32, %arg1: i32) -> (i32, i32, i32) {
    %c2_i32 = arith.constant 2 : i32
    %0 = arith.muli %arg1, %c2_i32 : i32
    %c1_i32 = arith.constant 1 : i32
    %1 = arith.subi %0, %c1_i32 : i32
    %c0_i32 = arith.constant 0 : i32
    %2 = arith.maxsi %1, %c0_i32 : i32
    %c0_i32_0 = arith.constant 0 : i32
    %c0_i32_1 = arith.constant 0 : i32
    return %arg0, %2, %c0_i32_0 : i32, i32, i32
  }
  func.func @transform_2(%arg0: i32, %arg1: i32) -> (i32, i32, i32) {
    %c0_i32 = arith.constant 0 : i32
    %c0_i32_0 = arith.constant 0 : i32
    %c0_i32_1 = arith.constant 0 : i32
    return %arg0, %c0_i32, %c0_i32_0 : i32, i32, i32
  }
  func.func @transform_3(%arg0: i32, %arg1: i32) -> (i32, i32) {
    %c0_i32 = arith.constant 0 : i32
    %c0_i32_0 = arith.constant 0 : i32
    %c0_i32_1 = arith.constant 0 : i32
    return %c0_i32, %c0_i32_0 : i32, i32
  }
  func.func @transform_4(%arg0: i32, %arg1: i32) -> (i32, i32) {
    %c0_i32 = arith.constant 0 : i32
    %c0_i32_0 = arith.constant 0 : i32
    %c0_i32_1 = arith.constant 0 : i32
    return %c0_i32, %c0_i32_0 : i32, i32
  }
  func.func @transform_5(%arg0: i32, %arg1: i32) -> (i32, i32, i32) {
    %c0_i32 = arith.constant 0 : i32
    %c0_i32_0 = arith.constant 0 : i32
    return %arg0, %arg1, %c0_i32 : i32, i32, i32
  }
}

</mosaic_0001>

<bundles_post_ra>
// kernel: tpu_custom_call.1
= control target key start
LH: loop header
LB: loop body
LE: loop exit
PB: predicated region body
PF: predicated region fallthrough
CT: control target
= control target key end

     0   :  { %s1168_s0 = inlined_call_operand.hbm [shape: f32[2,16,128], index: 0, kind: input, shape index: {}]   ;;  %s1169_s1 = inlined_call_operand.hbm [shape: f32[2,16,128], index: 1, kind: input, shape index: {}]   ;;  %s1170_s2 = inlined_call_operand.hbm [shape: f32[2,8,128], index: 2, kind: input, shape index: {}]   ;;  %s1171_s3 = inlined_call_operand.hbm [shape: f32[4,128], index: 3, kind: input, shape index: {}]   ;;  %s1172_s4 = inlined_call_operand.vmem [shape: f32[1,128], index: 4, kind: input, shape index: {}]   ;;  %s1173_s5 = inlined_call_operand.hbm [shape: f32[2,16,128], index: 5, kind: output, shape index: {}]  }
   0x1   :  { %1180 = sst [smem:[#allocation20_spill]] %s1168_s0 }
   0x2   :  { %1181 = sst [smem:[#allocation21_spill]] %s1169_s1 }
   0x3   :  { %1182 = sst [smem:[#allocation22_spill]] %s1171_s3 }
   0x4   :  { %10 = vsyncpa [#allocation3], 0 }
   0x5   :  { %12 = vsyncpa [#allocation3 + $0x1], 0 }
   0x6   :  { %13 = vsyncpa [#allocation6], 0 }
   0x7   :  { %15 = vsyncpa [#allocation6 + $0x1], 0 }
   0x8   :  { %16 = vsyncpa [#allocation9], 0 }
   0x9   :  { %17 = vsyncpa [#allocation4], 0 }
   0xa   :  { %19 = vsyncpa [#allocation4 + $0x1], 0  ;;  %s974_s18 = smov 0   ;;  %s976_s19 = smov 0  }
   0xb   :  { %s978_s20 = smov 0   ;;  %s980_s21 = smov 0  }
   0xc   :  { %s982_s22 = smov 0   ;;  %s984_s23 = smov 0  }
   0xd LB: > { %1183 = sst [smem:[#allocation15_spill]] %s925_s20  ;;  %s37_s24 = sadd.s32 1, %s933_s22  ;;  %s937_s23 = sphi %s984_s23, %s25_s23   ;;  %s933_s22 = sphi %s982_s22, %s1205_s22   ;;  %s929_s21 = sphi %s980_s21, %s1204_s21   ;;  %s925_s20 = sphi %s978_s20, %s1200_s20   ;;  %s921_s19 = sphi %s976_s19, %s1203_s19   ;;  %s917_s18 = sphi %s974_s18, %s1202_s18  }
   0xe   : > { %1184 = sst [smem:[#allocation16_spill]] %s937_s23  ;;  %s46_s25 = sadd.s32 1, %s925_s20 }
   0xf   : > { %p39_p0 = scmp.ge.s32.totalorder %s37_s24, 2  ;;  %p53_p1 = scmp.ne.s32.totalorder %s925_s20, %s921_s19 }
  0x10   : > { %p54_p2 = scmp.eq.s32.totalorder %s937_s23, 0  ;;  %p616_p3 = scmp.ge.s32.totalorder %s937_s23, 2 }
  0x11   : > { %s1207_s24 = smov (%p39_p0, %s37_s24), 0  ;;  %p670_p5 = scmp.lt.s32.totalorder %s937_s23, 2 }
  0x12   : > { %1185 = sst [smem:[#allocation17_spill]] %s1207_s24  ;;  %p55_p4 = por %p54_p2, %p53_p1 }
  0x13   : > { %s41_s26 = ssub.s32 %s933_s22, %s1207_s24  ;;  %s1019_s27 = sand.u32 1, %s925_s20  }
  0x14   : > { %p44_p6 = scmp.eq.s32.totalorder %s41_s26, 0  ;;  %s636_s28 = sshll.u32 %s933_s22, 4 }
  0x15   : > { %s1186_s0 = sld [smem:[#allocation20_spill]]  ;;  %p1025_p7 = pnand %p670_p5, %p55_p4 }
  0x16   : > { %s1030_s8 = scalar_select %p44_p6, %s925_s20, %s46_s25  }
  0x17   : > { %s254_s10 = sand.u32 1, %s937_s23   ;;  %s1174_s11 = sshll.u32 %s1019_s27, 3 }
  0x18   : > { %1188 = sst [smem:[#allocation18_spill]] %s1030_s8  ;;  %s258_s16 = scalar_lea.vmem [#allocation5], %s1174_s11 }
  0x19   : > { %s1189_s1 = sld [smem:[#allocation21_spill]]  ;;  %s272_s17 = sshll.u32 %s258_s16, 4  ;;  %s273_s17 = int_to_ptr.vmem [resolvable:$true] %s272_s17 }
  0x1a   : > { %s1041_s25 = scalar_lea.sflag [#allocation6], %s254_s10  ;;  %s1047_s26 = sadd.s32 4294967295, %s937_s23  }
  0x1b   : > { %s241_s6 = scalar_lea.hbm %s1186_s0, %s636_s28  ;;  %p59_p8 = scmp.ne.s32.totalorder %s921_s19, %s917_s18 }
  0x1c   : > { %s242_s9 = sshll.u32 %s241_s6, 4  ;;  %p60_p9 = scmp.eq.s32.totalorder %s1047_s26, 0  ;;  %s1032_s9 = int_to_ptr.hbm [resolvable:$true] %s242_s9 }
  0x1d   : > { %p189_p10 = scmp.eq.s32.totalorder %s1047_s26, 1  ;;  %p614_p12 = scmp.ge.s32.totalorder %s937_s23, 1 }
  0x1e   : > { %p1057_p13 = por %p60_p9, %p59_p8  ;;  %p202_p4 = scmp.lt.s32.totalorder %s937_s23, 3 }
  0x1f   : > { %s268_s14 = scalar_lea.hbm %s1189_s1, %s636_s28  ;;  %s613_s28 = sadd.s32 4294967294, %s937_s23  }
  0x20   : > { %s270_s15 = sshll.u32 %s268_s14, 4  ;;  %p195_p11 = scmp.eq.s32.totalorder %s613_s28, 1  ;;  %s271_s15 = int_to_ptr.hbm [resolvable:$true] %s270_s15 }
  0x21   : > { %661 = dma.hbm_to_vmem [thread:$0]  (!%p1025_p7), %s271_s15, 128, %s273_s17, %s1041_s25  }
  0x22   : > { %p1064_p0 = por %p189_p10, %p53_p1  ;;  %p1068_p2 = por %p195_p11, %p59_p8 }
  0x23   : > { %s1194_s3 = sld [smem:[#allocation22_spill]]  ;;  %p1076_p5 = pnand %p614_p12, %p202_p4 }
  0x24   : > { %s1192_s6 = scalar_select %p1068_p2, 1, 0 }
  0x25   : > { %p651_p1 = pneg %p1076_p5  ;;  %s939_s15 = smov [#allocation8]  }
  0x26   : > { %1193 = sst [smem:[#allocation19_spill]] %s1192_s6  ;;  %s216_s16 = sshll.u32 %s939_s15, 4  ;;  %s217_s16 = int_to_ptr.vmem [resolvable:$true] %s216_s16 }
  0x27   : > { %s617_s17 = sshll.u32 %s1019_s27, 4  ;;  %p652_p6 = pnand %p651_p1, %p60_p9 }
  0x28   : > { %s234_s28 = scalar_lea.vmem [#allocation2], %s617_s17  ;;  %s624_s12 = sshll.u32 %s933_s22, 3 }
  0x29   : > { %s214_s13 = sshll.u32 %s1194_s3, 4  ;;  %s244_s10 = sshll.u32 %s234_s28, 4  ;;  %s215_s13 = int_to_ptr.hbm [resolvable:$true] %s214_s13  ;;  %s245_s10 = int_to_ptr.vmem [resolvable:$true] %s244_s10 }
  0x2a   : > { %654 = dma.hbm_to_vmem [thread:$0]  (!%p652_p6), %s215_s13, 64, %s217_s16, [#allocation9]  }
  0x2b   : > { %s231_s11 = scalar_lea.sflag [#allocation3], %s1019_s27  ;;  %s940_s0 = smov 128  }
  0x2c   : > { %s941_s1 = smov 8   ;;  %s287_s15 = scalar_lea.hbm %s1170_s2, %s624_s12 }
  0x2d   : > { %658 = dma.hbm_to_vmem [thread:$0]  (!%p1025_p7), %s1032_s9, 256, %s245_s10, %s231_s11, %s940_s0, %s940_s0, %s941_s1  }
  0x2e   : > { %s1196_s8 = sshll.u32 %s1019_s27, 3  ;;  %s289_s6 = sshll.u32 %s287_s15, 4  ;;  %s290_s6 = int_to_ptr.hbm [resolvable:$true] %s289_s6 }
  0x2f   : > { %s283_s20 = scalar_lea.vmem [#allocation7], %s1196_s8  ;;  %300 = sbr.rel (%p1076_p5) target bundleno = 81 (0x51), region = 40 }
  0x30   : > { %s291_s23 = sshll.u32 %s283_s20, 4  ;;  %s1101_s13 = sand.u32 (!%p1076_p5), 1, %s921_s19   ;;  %s292_s23 = int_to_ptr.vmem [resolvable:$true] %s291_s23 }
  0x31   : > { %664 = dma.hbm_to_vmem [thread:$0]  (!%p1025_p7), %s290_s6, 128, %s292_s23, %s1041_s25  }
  0x32   : > { %s626_s0 = sshll.u32 (!%p1076_p5), %s1101_s13, 4  ;;  %s303_s1 = scalar_lea.sflag (!%p1076_p5), [#allocation3], %s1101_s13 }
  0x33   : > { %s306_s3 = scalar_lea.vmem (!%p1076_p5), [#allocation2], %s626_s0 }
  0x34   : > { %900 = dma.done.wait (%p1057_p13), %s303_s1, 256  }
  0x35   : > { %902 = vsyncadd (%p1057_p13), %s303_s1, 4294967040  ;;  %s312_s20 = sand.u32 1, %s1047_s26  }
  0x36   : > { %s313_s23 = scalar_lea.sflag [#allocation6], %s312_s20 }
  0x37   : > { %904 = dma.done.wait (%p1057_p13), %s313_s23, 256  }
  0x38   : > { %906 = vsyncadd (%p1057_p13), %s313_s23, 4294967040  ;;  %s628_s24 = sshll.u32 %s1101_s13, 3 }
  0x39   : > { %s326_s27 = scalar_lea.vmem [#allocation7], %s628_s24 }
  0x3a   : > { %908 = dma.done.wait (%p60_p9), [#allocation9], 64  }
  0x3b   : > { %910 = vsyncadd (%p60_p9), [#allocation9], 4294967232  ;;  %v376_v0 = vld [vmem:[%s326_s27] sm:$0xff]  ;;  %v382_v1 = vld [vmem:[%s306_s3] sm:$0xff]  ;;  %vm403_vm0 = vcmask 1046528   ;;  %vm422_vm1 = vcmask 1045504  }
  0x3c   : > { %v384_v2 = vld [vmem:[#allocation8] sm:$0xf]  ;;  %v383_v8 = vld [vmem:[%s306_s3 + $0x8] sm:$0xff]  ;;  %s638_s9 = sshll.u32 %s929_s21, 4  ;;  %vm439_vm2 = vcmask 1044480   ;;  %s368_s21 = scalar_lea.vmem [#allocation10], %s626_s0 }
  0x3d   : > { %v726_v3 = vld [vmem:[%s1172_s4] ss:$0 sm:$0xff]  ;;  %v389_v4 = vperm.slane %v384_v2, 0  ;;  %v396_v5 = vperm.slane %v384_v2, 1  ;;  %v415_v6 = vperm.slane %v384_v2, 2  ;;  %v434_v7 = vperm.slane %v384_v2, 3  ;;  %s466_s26 = scalar_lea.hbm %s1173_s5, %s638_s9 }
  0x3e   : > { %s467_s29 = sshll.u32 %s368_s21, 4  ;;  %s469_s6 = sshll.u32 %s466_s26, 4  ;;  %s468_s29 = int_to_ptr.vmem [resolvable:$true] %s467_s29  ;;  %s470_s6 = int_to_ptr.hbm [resolvable:$true] %s469_s6 }
  0x3f   : > { %v390_v9 = vmul.f32 %v389_v4, %v376_v0  ;;  %v397_v10 = vmul.f32 %v396_v5, %v376_v0  ;;  %v398_v11 = vmul.f32 %v396_v5, %v382_v1  ;;  %v391_v12 = vmul.f32 %v389_v4, %v382_v1  ;;  %s453_s14 = scalar_lea.sflag [#allocation4], %s1101_s13  ;;  %s861_s16 = sshra.s32 %s470_s6, 4  ;;  %s862_s16 = int_to_ptr.hbm [resolvable:$true] %s861_s16 }
  0x40   : > { %v416_v13 = vmul.f32 %v415_v6, %v376_v0  ;;  %v417_v14 = vmul.f32 %v415_v6, %v382_v1  ;;  %v435_v15 = vmul.f32 %v434_v7, %v382_v1  ;;  %v399_v16 = vmul.f32 %v396_v5, %v383_v8  ;;  %s863_s17 = scalar_lea.hbm %s862_s16, 16  ;;  %s867_s12 = scalar_lea.hbm %s1173_s5, 32 }
  0x41   : > { %v393_v17 = vadd.f32 %v726_v3, %v390_v9  ;;  %v404_v18 = vrot.slane %v397_v10, 1  ;;  %v405_v19 = vrot.slane %v398_v11, 1  ;;  %v394_v20 = vadd.f32 %v726_v3, %v391_v12  ;;  %p864_p7 = scmp.ne.s32.totalorder %s862_s16, %s863_s17  ;;  %p868_p10 = scmp.lt.s32.totalorder %s862_s16, %s1173_s5 }
  0x42   : > { %v423_v21 = vrot.slane %v416_v13, 2  ;;  %v424_v22 = vrot.slane %v417_v14, 2  ;;  %v440_v23 = vrot.slane %v435_v15, 3  ;;  %v407_v24 = vrot.slane %v399_v16, 1  ;;  %p869_p11 = scmp.lt.s32.totalorder %s867_s12, %s863_s17 }
  0x43   : > { %v406_v25 = vsel %vm403_vm0, %v404_v18, %v405_v19  ;;  %v418_v26 = vmul.f32 %v415_v6, %v383_v8  ;;  %v436_v27 = vmul.f32 %v434_v7, %v383_v8  ;;  %v392_v28 = vmul.f32 %v389_v4, %v383_v8  ;;  %p865_p8 = pnand %p864_p7, %p1064_p0 }
  0x44   : > { %v412_v29 = vadd.f32 %v406_v25, %v393_v17  ;;  %v425_v30 = vsel %vm422_vm1, %v423_v21, %v424_v22  ;;  %v408_v31 = vsel %vm403_vm0, %v405_v19, %v407_v24  ;;  %p870_p12 = por %p869_p11, %p868_p10 }
  0x45   : > { %v413_v32 = vadd.f32 %v408_v31, %v394_v20  ;;  %v426_v33 = vrot.slane %v418_v26, 2  ;;  %v441_v34 = vrot.slane %v436_v27, 3  ;;  %v395_v35 = vadd.f32 %v726_v3, %v392_v28  ;;  %p866_p9 = pneg %p865_p8 }
  0x46   : > { %v431_v36 = vadd.f32 %v425_v30, %v412_v29 }
  0x47   : > { %v427_v37 = vsel %vm422_vm1, %v424_v22, %v426_v33  ;;  %v442_v38 = vsel %vm439_vm2, %v440_v23, %v441_v34  ;;  %v414_v39 = vadd.f32 %v407_v24, %v395_v35  ;;  %p871_p13 = pnand %p870_p12, %p866_p9 }
  0x48   : > { %v446_v40 = vadd.f32 %v440_v23, %v431_v36  ;;  %v432_v41 = vadd.f32 %v427_v37, %v413_v32 }
  0x49   : > { %v433_v42 = vadd.f32 %v426_v33, %v414_v39 }
  0x4a   : > { %449 = vst [vmem:[%s368_s21 - $0x5] sm:$0xe0] %v446_v40  ;;  %v447_v43 = vadd.f32 %v442_v38, %v432_v41 }
  0x4b   : > { %v448_v44 = vadd.f32 %v441_v34, %v433_v42 }
  0x4c   : > { %450 = vst [vmem:[%s368_s21 + $0x3] sm:$0xff] %v447_v43 }
  0x4d   : > { %451 = vst [vmem:[%s368_s21 + $0xb] sm:$0x1f] %v448_v44 }
  0x4e   : > { %874 = shalt.err (!%p871_p13)
}
  0x4f   : > { %s942_s13 = smov 128   ;;  %s943_s1 = smov 8  }
  0x50   : > { %649 = dma.vmem_to_hbm [thread:$0]  (%p1064_p0), %s468_s29, 256, %s470_s6, %s453_s14, %s942_s13, %s942_s13, %s943_s1  }
  0x51 PF: > { %s1198_s20 = sld [smem:[#allocation16_spill]]  ;;  %s484_s23 = sand.u32 1, %s917_s18  }
  0x52   : > { %p666_p4 = pnand %p616_p3, %p1068_p2  ;;  %s485_s24 = scalar_lea.sflag [#allocation4], %s484_s23 }
  0x54   : > { %p667_p5 = pneg %p666_p4 }
  0x56   : > { %912 = dma.done.wait (%p667_p5), %s485_s24, 256  }
  0x57   : > { %914 = vsyncadd (%p667_p5), %s485_s24, 4294967040  ;;  %s25_s23 = sadd.s32 1, %s1198_s20   ;;  %s1199_s27 = sld [smem:[#allocation15_spill]] }
  0x58   : > { %p22_p1 = scmp.ge.s32.totalorder %s25_s23, 4   ;;  %s1200_s20 = sld [smem:[#allocation18_spill]] }
  0x59   : > { %s1201_s30 = sld [smem:[#allocation17_spill]]  ;;  %s1202_s18 = smov %s921_s19 }
  0x5a   : > { %s1204_s21 = smov %s933_s22 }
  0x5b   :  { %24 = sbr.rel (!%p22_p1) target bundleno = 13 (0xd), region = 113 }
  0x5d   : > { %s1203_s19 = smov %s1199_s27 }
  0x5f   : > { %s1205_s22 = smov %s1201_s30 }
  0x60   :  { %491 = vsyncpa [#allocation3], 1 }
  0x61   :  { %493 = vsyncpa [#allocation3 + $0x1], 1 }
  0x62   :  { %494 = vsyncpa [#allocation6], 1 }
  0x63   :  { %496 = vsyncpa [#allocation6 + $0x1], 1 }
  0x64   :  { %497 = vsyncpa [#allocation9], 1 }
  0x65   :  { %498 = vsyncpa [#allocation4], 1 }
  0x66   :  { %500 = vsyncpa [#allocation4 + $0x1], 1 }

</bundles_post_ra>
